<compile_context>
chip_gen: v7x
topology: tpu7x:2x2x1
jax: 0.10.0
libtpu: 0.0.40
codegen_flags: <defaults>
</compile_context>

<pallas_src>
import math
import functools

import jax
import jax.numpy as jnp
from jax import lax
from jax.experimental import pallas as pl
from jax.experimental.pallas import tpu as pltpu


DOT_DTYPE = jnp.bfloat16            # MXU input dtype (f32 accumulation everywhere)
VMEM_LIMIT_BYTES = 32 * 1024 * 1024  # safe scoped-VMEM cap on v5e/v6e/v7x
LN_EPS = 1e-5                        # torch.nn.LayerNorm default


def _row_tile(M, target=256):
    """Largest multiple-of-8 divisor of M not exceeding `target` (or M itself)."""
    if M <= target:
        return M
    for tm in range(target, 7, -8):
        if M % tm == 0:
            return tm
    return M


def _layernorm(x, g, b):
    mu = jnp.mean(x, axis=-1, keepdims=True)
    var = jnp.mean((x - mu) * (x - mu), axis=-1, keepdims=True)
    return (x - mu) * jax.lax.rsqrt(var + LN_EPS) * g + b


# ----------------------------- Pallas kernels -----------------------------

def _ln_qkv_kernel(x_ref, g_ref, b_ref, w_ref, bias_ref, o_ref):
    # x_ref: (tm, D); g/b: (1, D); w_ref: (D, 3D); bias_ref: (1, 3D); o_ref: (tm, 3D)
    xn = _layernorm(x_ref[...], g_ref[...], b_ref[...])            # f32 epilogue math
    y = jnp.dot(xn.astype(DOT_DTYPE), w_ref[...].astype(DOT_DTYPE),
                preferred_element_type=jnp.float32)
    o_ref[...] = y + bias_ref[...]


def _attn_wo_res_kernel(qkv_ref, mbias_ref, x_ref, wo_ref, bo_ref, o_ref, *, n_heads):
    # qkv_ref: (1, S, 3D); mbias_ref: (1, 1, S) additive bias (0 or -1e9);
    # x_ref: (1, S, D) residual; wo_ref: (D, D); bo_ref: (1, D); o_ref: (1, S, D)
    S = qkv_ref.shape[1]
    D = qkv_ref.shape[2] // 3
    dk = D // n_heads
    scale = 1.0 / math.sqrt(dk)

    qkv = qkv_ref[0]                                   # (S, 3D) f32
    q = (qkv[:, 0:D] * scale).astype(DOT_DTYPE)        # fold scale once (VPU saving)
    k = qkv[:, D:2 * D].astype(DOT_DTYPE)
    v = qkv[:, 2 * D:3 * D].astype(DOT_DTYPE)
    mbias = mbias_ref[0]                               # (1, S), broadcasts over queries
    wo = wo_ref[...].astype(DOT_DTYPE)                 # (D, D), cast once

    acc = jnp.zeros((S, D), jnp.float32)
    for h in range(n_heads):                           # static unroll, heads are lane slices
        sl = slice(h * dk, (h + 1) * dk)
        qh, kh, vh = q[:, sl], k[:, sl], v[:, sl]
        # q . k^T without materializing a transpose: contract last dims directly.
        s = lax.dot_general(qh, kh, (((1,), (1,)), ((), ())),
                            preferred_element_type=jnp.float32)    # (S, S) f32
        s = s + mbias                                              # additive mask bias
        m = jnp.max(s, axis=-1, keepdims=True)
        p = jnp.exp(s - m)
        p = p * pl.reciprocal(jnp.sum(p, axis=-1, keepdims=True), approx=True)
        oh = jnp.dot(p.astype(DOT_DTYPE), vh,
                     preferred_element_type=jnp.float32)           # (S, dk)
        # concat(heads) @ Wo  ==  sum_h head_h @ Wo[h*dk:(h+1)*dk, :]  (fused Wo)
        acc = acc + jnp.dot(oh.astype(DOT_DTYPE), wo[sl, :],
                            preferred_element_type=jnp.float32)    # (S, D)

    # lane-dense (S, D) store, residual add fused in
    o_ref[0] = acc + bo_ref[...] + x_ref[0]


def _ln_ffn_res_kernel(x_ref, g_ref, b_ref, w1_ref, b1_ref, w2_ref, b2_ref, o_ref):
    # x_ref: (tm, D) (LN input AND residual); w1: (D, dff); w2: (dff, D); o_ref: (tm, D)
    x = x_ref[...]
    xn = _layernorm(x, g_ref[...], b_ref[...])
    h = jnp.dot(xn.astype(DOT_DTYPE), w1_ref[...].astype(DOT_DTYPE),
                preferred_element_type=jnp.float32) + b1_ref[...]
    h = jnp.maximum(h, 0.0)                                         # f32 ReLU epilogue
    y = jnp.dot(h.astype(DOT_DTYPE), w2_ref[...].astype(DOT_DTYPE),
                preferred_element_type=jnp.float32) + b2_ref[...]
    o_ref[...] = x + y                                              # fused residual


# ----------------------------- wrappers (glue) -----------------------------

def ln_qkv(x2d, gamma, beta, w_qkv, b_qkv, *, tm):
    M, D = x2d.shape
    N = w_qkv.shape[1]
    return pl.pallas_call(
        _ln_qkv_kernel,
        out_shape=jax.ShapeDtypeStruct((M, N), jnp.float32),
        grid=(M // tm,),
        in_specs=[
            pl.BlockSpec((tm, D), lambda i: (i, 0)),
            pl.BlockSpec((1, D), lambda i: (0, 0)),
            pl.BlockSpec((1, D), lambda i: (0, 0)),
            pl.BlockSpec((D, N), lambda i: (0, 0)),
            pl.BlockSpec((1, N), lambda i: (0, 0)),
        ],
        out_specs=pl.BlockSpec((tm, N), lambda i: (i, 0)),
        compiler_params=pltpu.CompilerParams(
            dimension_semantics=("parallel",),
            vmem_limit_bytes=VMEM_LIMIT_BYTES),
        cost_estimate=pl.CostEstimate(
            flops=int(2 * M * D * N),
            transcendentals=int(M),
            bytes_accessed=int(4 * (M * D + D * N + M * N))),
    )(x2d, gamma.reshape(1, D), beta.reshape(1, D), w_qkv, b_qkv.reshape(1, N))


def attn_wo_residual(qkv, mask_bias, x, wo, bo, n_heads):
    # qkv: (B, S, 3D); mask_bias: (B, 1, S); x: (B, S, D) residual
    B, S, D3 = qkv.shape
    D = D3 // 3
    kernel = functools.partial(_attn_wo_res_kernel, n_heads=n_heads)
    return pl.pallas_call(
        kernel,
        out_shape=jax.ShapeDtypeStruct((B, S, D), jnp.float32),
        grid=(B,),
        in_specs=[
            pl.BlockSpec((1, S, D3), lambda b: (b, 0, 0)),
            pl.BlockSpec((1, 1, S), lambda b: (b, 0, 0)),
            pl.BlockSpec((1, S, D), lambda b: (b, 0, 0)),
            pl.BlockSpec((D, D), lambda b: (0, 0)),
            pl.BlockSpec((1, D), lambda b: (0, 0)),
        ],
        out_specs=pl.BlockSpec((1, S, D), lambda b: (b, 0, 0)),
        compiler_params=pltpu.CompilerParams(
            dimension_semantics=("parallel",),
            vmem_limit_bytes=VMEM_LIMIT_BYTES),
        cost_estimate=pl.CostEstimate(
            flops=int(B * (4 * S * S * D + 2 * S * D * D)),
            transcendentals=int(B * n_heads * S * S),
            bytes_accessed=int(4 * (B * S * D3 + B * S + 2 * B * S * D + D * D))),
    )(qkv, mask_bias, x, wo, bo.reshape(1, D))


def ln_ffn_residual(x2d, gamma, beta, w1, b1, w2, b2, *, tm):
    M, D = x2d.shape
    dff = w1.shape[1]
    return pl.pallas_call(
        _ln_ffn_res_kernel,
        out_shape=jax.ShapeDtypeStruct((M, D), jnp.float32),
        grid=(M // tm,),
        in_specs=[
            pl.BlockSpec((tm, D), lambda i: (i, 0)),
            pl.BlockSpec((1, D), lambda i: (0, 0)),
            pl.BlockSpec((1, D), lambda i: (0, 0)),
            pl.BlockSpec((D, dff), lambda i: (0, 0)),
            pl.BlockSpec((1, dff), lambda i: (0, 0)),
            pl.BlockSpec((dff, D), lambda i: (0, 0)),
            pl.BlockSpec((1, D), lambda i: (0, 0)),
        ],
        out_specs=pl.BlockSpec((tm, D), lambda i: (i, 0)),
        compiler_params=pltpu.CompilerParams(
            dimension_semantics=("parallel",),
            vmem_limit_bytes=VMEM_LIMIT_BYTES),
        cost_estimate=pl.CostEstimate(
            flops=int(4 * M * D * dff),
            transcendentals=int(M),
            bytes_accessed=int(4 * (2 * M * D + 2 * D * dff))),
    )(x2d, gamma.reshape(1, D), beta.reshape(1, D),
      w1, b1.reshape(1, dff), w2, b2.reshape(1, D))


def encoder_layer(x, mask, params, n_heads):
    """x: (B, S, D) f32, mask: (B, 1, S) f32 (1 = attend, 0 = masked). Returns (B, S, D)."""
    B, S, D = x.shape
    M = B * S
    tm = _row_tile(M)

    # ---- sublayer 0: x + Wo(self_attn(LN1(x))) ----
    qkv = ln_qkv(x.reshape(M, D), params["ln1_g"], params["ln1_b"],
                 params["w_qkv"], params["b_qkv"], tm=tm)           # (M, 3D)
    mask_bias = (mask - 1.0) * 1e9                                   # additive: 0 / -1e9
    x = attn_wo_residual(qkv.reshape(B, S, 3 * D), mask_bias, x,
                         params["wo"], params["bo"], n_heads)        # (B, S, D)

    # ---- sublayer 1: x + FFN(LN2(x)) ----
    y2d = ln_ffn_residual(x.reshape(M, D), params["ln2_g"], params["ln2_b"],
                          params["w1"], params["b1"],
                          params["w2"], params["b2"], tm=tm)
    return y2d.reshape(B, S, D)


# --------------------------- pure-JAX reference ---------------------------

def _reference(x, mask, p, n_heads):
    B, S, D = x.shape
    dk = D // n_heads

    def ln(z, g, b):
        mu = jnp.mean(z, -1, keepdims=True)
        var = jnp.mean((z - mu) ** 2, -1, keepdims=True)
        return (z - mu) * jax.lax.rsqrt(var + LN_EPS) * g + b

    xn = ln(x, p["ln1_g"], p["ln1_b"])
    qkv = xn @ p["w_qkv"] + p["b_qkv"]
    q, k, v = jnp.split(qkv, 3, axis=-1)
    q = q.reshape(B, S, n_heads, dk).transpose(0, 2, 1, 3)
    k = k.reshape(B, S, n_heads, dk).transpose(0, 2, 1, 3)
    v = v.reshape(B, S, n_heads, dk).transpose(0, 2, 1, 3)
    s = jnp.einsum("bhqd,bhkd->bhqk", q, k) / math.sqrt(dk)
    s = jnp.where(mask[:, None, :, :] == 0.0, -1e9, s)
    a = jax.nn.softmax(s, axis=-1)
    o = jnp.einsum("bhqk,bhkd->bhqd", a, v).transpose(0, 2, 1, 3).reshape(B, S, D)
    x = x + (o @ p["wo"] + p["bo"])
    xn = ln(x, p["ln2_g"], p["ln2_b"])
    ff = jnp.maximum(xn @ p["w1"] + p["b1"], 0.0) @ p["w2"] + p["b2"]
    return x + ff


# --------------------------------- main ---------------------------------

if __name__ == "__main__":
    B, S, D = 2, 8, 32
    H, D_FF = 4, 64

    key = jax.random.PRNGKey(0)
    keys = jax.random.split(key, 8)

    def w(k, shape, scale=0.05):
        return (scale * jax.random.normal(k, shape)).astype(jnp.float32)

    wq, wk, wv = w(keys[0], (D, D)), w(keys[1], (D, D)), w(keys[2], (D, D))
    params = {
        "ln1_g": jnp.ones((D,), jnp.float32), "ln1_b": jnp.zeros((D,), jnp.float32),
        "ln2_g": jnp.ones((D,), jnp.float32), "ln2_b": jnp.zeros((D,), jnp.float32),
        # fused QKV projection weight (one MXU pass instead of three)
        "w_qkv": jnp.concatenate([wq, wk, wv], axis=1),
        "b_qkv": jnp.zeros((3 * D,), jnp.float32),
        "wo": w(keys[3], (D, D)), "bo": jnp.zeros((D,), jnp.float32),
        "w1": w(keys[4], (D, D_FF)), "b1": jnp.zeros((D_FF,), jnp.float32),
        "w2": w(keys[5], (D_FF, D)), "b2": jnp.zeros((D,), jnp.float32),
    }

    x = jax.random.normal(keys[6], (B, S, D), dtype=jnp.float32)
    mask = jnp.ones((B, 1, S), dtype=jnp.float32)
    # mask out the last key position of batch 1 to exercise masking
    mask = mask.at[1, 0, S - 1].set(0.0)

    out = encoder_layer(x, mask, params, H)
    out = jax.block_until_ready(out)

    ref = _reference(x, mask, params, H)
    assert out.shape == (B, S, D)
    max_err = float(jnp.max(jnp.abs(out - ref)))
    # bf16 MXU inputs with f32 accumulation vs pure-f32 reference
    assert jnp.allclose(out, ref, atol=2e-2, rtol=2e-2), f"mismatch vs reference (max abs err {max_err})"

    print("KERNEL_OK")
</pallas_src>

<mosaic_0001>
module attributes {stable_mosaic.version = 11 : i64} {
  func.func @_ln_qkv_kernel(%arg0: i32, %arg1: memref<16x32xf32, #tpu.memory_space<vmem>>, %arg2: memref<1x32xf32, #tpu.memory_space<vmem>>, %arg3: memref<1x32xf32, #tpu.memory_space<vmem>>, %arg4: memref<32x96xf32, #tpu.memory_space<vmem>>, %arg5: memref<1x96xf32, #tpu.memory_space<vmem>>, %arg6: memref<16x96xf32, #tpu.memory_space<vmem>>) attributes {dimension_semantics = [#tpu.dimension_semantics<parallel>], iteration_bounds = array<i64: 1>, scalar_prefetch = 0 : i64, scratch_operands = 0 : i64, tpu.core_type = #tpu.core_type<tc>, window_params = [{transform_indices = @transform_0, window_bounds = array<i64: 16, 32>}, {pipeline_mode = #tpu.pipeline_mode<synchronous>, transform_indices = @transform_1, window_bounds = array<i64: 1, 32>}, {pipeline_mode = #tpu.pipeline_mode<synchronous>, transform_indices = @transform_2, window_bounds = array<i64: 1, 32>}, {pipeline_mode = #tpu.pipeline_mode<synchronous>, transform_indices = @transform_3, window_bounds = array<i64: 32, 96>}, {pipeline_mode = #tpu.pipeline_mode<synchronous>, transform_indices = @transform_4, window_bounds = array<i64: 1, 96>}, {transform_indices = @transform_5, window_bounds = array<i64: 16, 96>}]} {
    %c0 = arith.constant 0 : index
    %c0_0 = arith.constant 0 : index
    %0 = vector.load %arg1[%c0, %c0_0] : memref<16x32xf32, #tpu.memory_space<vmem>>, vector<16x32xf32>
    %c0_1 = arith.constant 0 : index
    %c0_2 = arith.constant 0 : index
    %1 = vector.load %arg2[%c0_1, %c0_2] : memref<1x32xf32, #tpu.memory_space<vmem>>, vector<1x32xf32>
    %c0_3 = arith.constant 0 : index
    %c0_4 = arith.constant 0 : index
    %2 = vector.load %arg3[%c0_3, %c0_4] : memref<1x32xf32, #tpu.memory_space<vmem>>, vector<1x32xf32>
    %cst = arith.constant dense<0.000000e+00> : vector<16xf32>
    %3 = vector.multi_reduction <add>, %0, %cst [1] : vector<16x32xf32> to vector<16xf32>
    %4 = vector.shape_cast %3 : vector<16xf32> to vector<16x1xf32>
    %cst_5 = arith.constant 3.200000e+01 : f32
    %5 = vector.broadcast %cst_5 : f32 to vector<16x1xf32>
    %6 = arith.divf %4, %5 : vector<16x1xf32>
    %7 = vector.broadcast %6 : vector<16x1xf32> to vector<16x32xf32>
    %8 = arith.subf %0, %7 : vector<16x32xf32>
    %9 = vector.broadcast %6 : vector<16x1xf32> to vector<16x32xf32>
    %10 = arith.subf %0, %9 : vector<16x32xf32>
    %11 = arith.mulf %8, %10 : vector<16x32xf32>
    %cst_6 = arith.constant dense<0.000000e+00> : vector<16xf32>
    %12 = vector.multi_reduction <add>, %11, %cst_6 [1] : vector<16x32xf32> to vector<16xf32>
    %13 = vector.shape_cast %12 : vector<16xf32> to vector<16x1xf32>
    %cst_7 = arith.constant 3.200000e+01 : f32
    %14 = vector.broadcast %cst_7 : f32 to vector<16x1xf32>
    %15 = arith.divf %13, %14 : vector<16x1xf32>
    %16 = vector.broadcast %6 : vector<16x1xf32> to vector<16x32xf32>
    %17 = arith.subf %0, %16 : vector<16x32xf32>
    %cst_8 = arith.constant 9.99999974E-6 : f32
    %18 = vector.broadcast %cst_8 : f32 to vector<16x1xf32>
    %19 = arith.addf %15, %18 : vector<16x1xf32>
    %20 = math.rsqrt %19 : vector<16x1xf32>
    %21 = vector.broadcast %20 : vector<16x1xf32> to vector<16x32xf32>
    %22 = arith.mulf %17, %21 : vector<16x32xf32>
    %23 = vector.broadcast %1 : vector<1x32xf32> to vector<16x32xf32>
    %24 = arith.mulf %22, %23 : vector<16x32xf32>
    %25 = vector.broadcast %2 : vector<1x32xf32> to vector<16x32xf32>
    %26 = arith.addf %24, %25 : vector<16x32xf32>
    %27 = arith.truncf %26 : vector<16x32xf32> to vector<16x32xbf16>
    %c0_9 = arith.constant 0 : index
    %c0_10 = arith.constant 0 : index
    %28 = vector.load %arg4[%c0_9, %c0_10] : memref<32x96xf32, #tpu.memory_space<vmem>>, vector<32x96xf32>
    %29 = arith.truncf %28 : vector<32x96xf32> to vector<32x96xbf16>
    %cst_11 = arith.constant dense<0.000000e+00> : vector<16x96xf32>
    %30 = tpu.matmul %27, %29, %cst_11 {dimension_numbers = #tpu.dot_dimension_numbers<[1], [0], [0], [1], [0, 0, 1, 1], [], []>} : vector<16x32xbf16>, vector<32x96xbf16>, vector<16x96xf32> -> vector<16x96xf32>
    %c0_12 = arith.constant 0 : index
    %c0_13 = arith.constant 0 : index
    %31 = vector.load %arg5[%c0_12, %c0_13] : memref<1x96xf32, #tpu.memory_space<vmem>>, vector<1x96xf32>
    %32 = vector.broadcast %31 : vector<1x96xf32> to vector<16x96xf32>
    %33 = arith.addf %30, %32 : vector<16x96xf32>
    %c0_14 = arith.constant 0 : index
    %c0_15 = arith.constant 0 : index
    %34 = vector.load %arg6[%c0_14, %c0_15] : memref<16x96xf32, #tpu.memory_space<vmem>>, vector<16x96xf32>
    tpu.vector_store %arg6[%c0_14, %c0_15], %33 {strides = array<i32>} : memref<16x96xf32, #tpu.memory_space<vmem>>, vector<16x96xf32>,
    return
  }
  func.func @transform_0(%arg0: i32) -> (i32, i32) {
    %c0_i32 = arith.constant 0 : i32
    %c0_i32_0 = arith.constant 0 : i32
    return %arg0, %c0_i32 : i32, i32
  }
  func.func @transform_1(%arg0: i32) -> (i32, i32) {
    %c0_i32 = arith.constant 0 : i32
    %c0_i32_0 = arith.constant 0 : i32
    %c0_i32_1 = arith.constant 0 : i32
    return %c0_i32, %c0_i32_0 : i32, i32
  }
  func.func @transform_2(%arg0: i32) -> (i32, i32) {
    %c0_i32 = arith.constant 0 : i32
    %c0_i32_0 = arith.constant 0 : i32
    %c0_i32_1 = arith.constant 0 : i32
    return %c0_i32, %c0_i32_0 : i32, i32
  }
  func.func @transform_3(%arg0: i32) -> (i32, i32) {
    %c0_i32 = arith.constant 0 : i32
    %c0_i32_0 = arith.constant 0 : i32
    %c0_i32_1 = arith.constant 0 : i32
    return %c0_i32, %c0_i32_0 : i32, i32
  }
  func.func @transform_4(%arg0: i32) -> (i32, i32) {
    %c0_i32 = arith.constant 0 : i32
    %c0_i32_0 = arith.constant 0 : i32
    %c0_i32_1 = arith.constant 0 : i32
    return %c0_i32, %c0_i32_0 : i32, i32
  }
  func.func @transform_5(%arg0: i32) -> (i32, i32) {
    %c0_i32 = arith.constant 0 : i32
    %c0_i32_0 = arith.constant 0 : i32
    return %arg0, %c0_i32 : i32, i32
  }
}

</mosaic_0001>

<bundles_post_ra>
// kernel: tpu_custom_call.1
= control target key start
LH: loop header
LB: loop body
LE: loop exit
PB: predicated region body
PF: predicated region fallthrough
CT: control target
= control target key end

     0   :  { %10 = vsyncpa [#allocation3], 0  ;;  %s371_s0 = inlined_call_operand.hbm [shape: f32[16,32], index: 0, kind: input, shape index: {}]   ;;  %s372_s1 = inlined_call_operand.vmem [shape: f32[1,32], index: 1, kind: input, shape index: {}]   ;;  %s373_s2 = inlined_call_operand.vmem [shape: f32[1,32], index: 2, kind: input, shape index: {}]   ;;  %s374_s3 = inlined_call_operand.hbm [shape: f32[32,96], index: 3, kind: input, shape index: {}]   ;;  %s375_s4 = inlined_call_operand.vmem [shape: f32[1,96], index: 4, kind: input, shape index: {}]   ;;  %s376_s5 = inlined_call_operand.hbm [shape: f32[16,96], index: 5, kind: output, shape index: {}]  }
   0x1   :  { %11 = vsyncpa [#allocation6], 0 }
   0x2   :  { %12 = vsyncpa [#allocation4], 0  ;;  %s275_s18 = smov [#allocation2]   ;;  %s203_s22 = scalar_lea.hbm %s371_s0, 256 }
   0x3   :  { %s18_s19 = sshll.u32 %s275_s18, 4  ;;  %p204_p0 = scmp.ne.s32.totalorder %s371_s0, %s203_s22  ;;  %s19_s19 = int_to_ptr.vmem [resolvable:$true] %s18_s19 }
   0x4   :  { %p207_p1 = scmp.lt.u32.totalorder %s203_s22, %s371_s0 }
   0x6   :  { %p209_p2 = pnand %p207_p1, %p204_p0 }
   0x8   :  { %212 = shalt.err (!%p209_p2)
}
   0x9   :  { %s213_s27 = scalar_lea.vmem %s19_s19, 256  ;;  %p218_p4 = scmp.lt.s32.totalorder %s19_s19, %s19_s19 }
   0xa   :  { %p214_p3 = scmp.ne.s32.totalorder %s19_s19, %s213_s27  ;;  %p219_p5 = scmp.lt.s32.totalorder %s213_s27, %s213_s27 }
   0xc   :  { %p220_p6 = por %p219_p5, %p218_p4 }
   0xe   :  { %p221_p7 = pnand %p220_p6, %p214_p3 }
  0x10   :  { %224 = shalt.err (!%p221_p7)
}
  0x11   :  { %s276_s28 = smov 128   ;;  %s277_s29 = smov 8  }
  0x12   :  { %24 = dma.hbm_to_vmem [thread:$0]  %s371_s0, 256, %s19_s19, [#allocation3], %s276_s28, %s276_s28, %s277_s29  }
  0x13   :  { %s278_s7 = smov [#allocation5]   ;;  %s225_s11 = scalar_lea.hbm %s374_s3, 512 }
  0x14   :  { %s34_s8 = sshll.u32 %s278_s7, 4  ;;  %p226_p8 = scmp.ne.s32.totalorder %s374_s3, %s225_s11  ;;  %s35_s8 = int_to_ptr.vmem [resolvable:$true] %s34_s8 }
  0x15   :  { %p229_p9 = scmp.lt.u32.totalorder %s225_s11, %s374_s3 }
  0x17   :  { %p231_p10 = pnand %p229_p9, %p226_p8 }
  0x19   :  { %234 = shalt.err (!%p231_p10)
}
  0x1a   :  { %s235_s16 = scalar_lea.vmem %s35_s8, 512  ;;  %p240_p12 = scmp.lt.s32.totalorder %s35_s8, %s35_s8 }
  0x1b   :  { %p236_p11 = scmp.ne.s32.totalorder %s35_s8, %s235_s16  ;;  %p241_p13 = scmp.lt.s32.totalorder %s235_s16, %s235_s16 }
  0x1d   :  { %p242_p0 = por %p241_p13, %p240_p12 }
  0x1f   :  { %p243_p1 = pnand %p242_p0, %p236_p11 }
  0x21   :  { %246 = shalt.err (!%p243_p1)
}
  0x22   :  { %40 = dma.hbm_to_vmem [thread:$0]  %s374_s3, 512, %s35_s8, [#allocation6], %s276_s28, %s276_s28, %s277_s29  }
  0x23   :  { %269 = dma.done.wait [#allocation3], 256  }
  0x24   :  { %270 = vsyncadd [#allocation3], 4294967040 }
  0x25   :  { %271 = dma.done.wait [#allocation6], 512  }
  0x26   :  { %272 = vsyncadd [#allocation6], 4294966784  ;;  %vm54_vm0 = vcmask 261120   ;;  %v50_v0 = vld [vmem:[#allocation2] sm:$0xff]  ;;  %v51_v1 = vld [vmem:[#allocation2 + $0x8] sm:$0xff]  ;;  %v279_v17 = vmov 0.0  }
  0x27   :  { %v55_v2 = vsel %vm54_vm0, %v50_v0, 0.0  ;;  %v58_v3 = vsel %vm54_vm0, %v51_v1, 0.0  ;;  %v99_v14 = vld [vmem:[#allocation5] sm:$0xff]  ;;  %v100_v15 = vld [vmem:[#allocation5 + $0x8] sm:$0xff]  ;;  %184 = vmatprep.subr.bf16.mxu0 %v279_v17  ;;  %v101_v18 = vld [vmem:[#allocation5 + $0x10] sm:$0xff]  ;;  %vm280_vm1 = vmmov 0  }
  0x28   :  { %56 = vadd.xlane.f32.xlu0 %v55_v2  ;;  %v103_v16 = vpack.c.bf16 %v100_v15, %v99_v14  ;;  %v102_v19 = vld [vmem:[#allocation5 + $0x18] sm:$0xff]  ;;  %188 = vmatprep.mubr.msk.bf16.mxu0 %vm280_vm1, %v279_v17  ;;  %v177_v29 = vld [vmem:[%s372_s1] ss:$0 sm:$0xff]  ;;  %vm156_vm2 = vcmask 785408   ;;  %s281_s1 = smov [#allocation7]  }
  0x29   :  { %v104_v20 = vpack.c.bf16 %v102_v19, %v101_v18  ;;  %v178_v33 = vld [vmem:[%s373_s2] ss:$0 sm:$0xff]  ;;  %s164_s23 = sshll.u32 %s281_s1, 4  ;;  %s165_s23 = int_to_ptr.vmem [resolvable:$true] %s164_s23 }
  0x2a   :  { %185 = vmatpush3.bf16.msra.mxu0 %v103_v16  ;;  %v179_v38 = vld [vmem:[%s375_s4] ss:$0 sm:$0xff]  ;;  %s247_s2 = scalar_lea.vmem %s165_s23, 256  ;;  %p252_p3 = scmp.lt.s32.totalorder %s165_s23, %s165_s23 }
  0x2b   :  { %186 = vmatprep.subr.bf16.mxu0 %v279_v17  ;;  %p248_p2 = scmp.ne.s32.totalorder %s165_s23, %s247_s2  ;;  %p253_p4 = scmp.lt.s32.totalorder %s247_s2, %s247_s2 }
  0x2c   :  { %59 = vadd.xlane.f32.xlu0 %v58_v3 }
  0x2d   :  { %p254_p5 = por %p253_p4, %p252_p3 }
  0x2e   :  { %187 = vmatpush3.bf16.msra.mxu0 %v104_v20 }
  0x2f   :  { %p255_p6 = pnand %p254_p5, %p248_p2 }
  0xb5   :  { %v57_v4 = vpop.xlane.xlu0 %56 }
  0xb6   :  { %v62_v5 = vmul.f32 0.03125, %v57_v4 }
  0xb8   :  { %v64_v6 = vsub.f32 %v50_v0, %v62_v5 }
  0xb9   :  { %v60_v7 = vpop.xlane.xlu0 %59 }
  0xba   :  { %v63_v8 = vmul.f32 0.03125, %v60_v7  ;;  %v66_v9 = vmul.f32 %v64_v6, %v64_v6 }
  0xbc   :  { %v65_v10 = vsub.f32 %v51_v1, %v63_v8  ;;  %v68_v11 = vsel %vm54_vm0, %v66_v9, 0.0 }
  0xbd   :  { %69 = vadd.xlane.f32.xlu1 %v68_v11 }
  0xbe   :  { %v67_v12 = vmul.f32 %v65_v10, %v65_v10 }
  0xc0   :  { %v71_v13 = vsel %vm54_vm0, %v67_v12, 0.0 }
  0xc1   :  { %72 = vadd.xlane.f32.xlu1 %v71_v13 }
 0x14a   :  { %v70_v21 = vpop.xlane.xlu1 %69 }
 0x14b   :  { %v74_v22 = vmul.f32 0.03125, %v70_v21 }
 0x14d   :  { %v76_v23 = vadd.f32 1e-05, %v74_v22 }
 0x14e   :  { %v73_v24 = vpop.xlane.xlu1 %72 }
 0x14f   :  { %199 = vrsqrt.f32 %v76_v23  ;;  %v75_v25 = vmul.f32 0.03125, %v73_v24 }
 0x151   :  { %v77_v26 = vadd.f32 1e-05, %v75_v25 }
 0x153   :  { %201 = vrsqrt.f32 %v77_v26 }
 0x159   :  { %v200_v27 = vpop.eup %199 }
 0x15a   :  { %v80_v28 = vmul.f32 %v200_v27, %v64_v6 }
 0x15c   :  { %v88_v32 = vmul.f32 %v177_v29, %v80_v28 }
 0x15d   :  { %v202_v30 = vpop.eup %201 }
 0x15e   :  { %v81_v31 = vmul.f32 %v202_v30, %v65_v10  ;;  %v96_v35 = vadd.f32 %v178_v33, %v88_v32 }
 0x160   :  { %v89_v34 = vmul.f32 %v177_v29, %v81_v31 }
 0x162   :  { %v97_v36 = vadd.f32 %v178_v33, %v89_v34 }
 0x164   :  { %v98_v37 = vpack.c.bf16 %v97_v36, %v96_v35 }
 0x166   :  { %189 = vmatmul.mubr.msk.bf16.vlgmr.msra.gmra.mrb[0].mxu0 %vm54_vm0, %v98_v37 }
 0x239   :  { %v149_v39 = vpop.f32.mrb[0].mxu0 }
 0x23a   :  { %v150_v40 = vadd.f32 %v179_v38, %v149_v39  ;;  %v190_v41 = vpop.f32.mrb[1].mxu0 }
 0x23b   :  { %v152_v42 = vpop.f32.mrb[2].mxu0 }
 0x23c   :  { %v153_v43 = vadd.f32 %v179_v38, %v152_v42  ;;  %v191_v44 = vpop.f32.mrb[3].mxu0  ;;  %157 = vst.msk [vmem:[#allocation7] sm:$0xff] %vm156_vm2, %v150_v40 }
 0x23e   :  { %158 = vst.msk [vmem:[#allocation7 + $0x8] sm:$0xff] %vm156_vm2, %v153_v43 }
 0x23f   :  { %258 = shalt.err (!%p255_p6)
}
 0x240   :  { %s259_s25 = scalar_lea.hbm %s376_s5, 256 }
 0x241   :  { %p260_p7 = scmp.ne.s32.totalorder %s376_s5, %s259_s25  ;;  %p263_p8 = scmp.lt.u32.totalorder %s259_s25, %s376_s5 }
 0x243   :  { %p265_p9 = pnand %p263_p8, %p260_p7 }
 0x245   :  { %268 = shalt.err (!%p265_p9)
}
 0x246   :  { %170 = dma.vmem_to_hbm [thread:$0]  %s165_s23, 256, %s376_s5, [#allocation4], %s276_s28, %s276_s28, %s277_s29  }
 0x247   :  { %273 = dma.done.wait [#allocation4], 256  }
 0x248   :  { %274 = vsyncadd [#allocation4], 4294967040 }
 0x249   :  { %174 = vsyncpa [#allocation3], 1 }
 0x24a   :  { %175 = vsyncpa [#allocation6], 1 }
 0x24b   :  { %176 = vsyncpa [#allocation4], 1 }

</bundles_post_ra>
